<compile_context>
chip_gen: v6e
topology: v6e:2x2x1
jax: 0.10.0
libtpu: 0.0.40
codegen_flags: <defaults>
</compile_context>

<pallas_src>
import jax
import jax.numpy as jnp
from jax.experimental import pallas as pl
from jax.experimental.pallas import tpu as pltpu

NEG_SLOPE = 0.2           # PyG GATv2Conv default negative_slope
MASK_VALUE = -1e30        # large negative (not -inf) mask -> no NaNs
LANE = 128
VMEM_LIMIT = 48 * 1024 * 1024   # fits v5e/v6e (128 MiB) and v7x (64 MiB) VMEM


def _round_up(x, m):
    return (x + m - 1) // m * m


# ---------------------------------------------------------------------------
# Kernel 1: fused linear projections  h_l = x @ WlT + bl,  h_r = x @ WrT + br
# grid = (num_row_tiles,)  [parallel]
# ---------------------------------------------------------------------------
def _proj_kernel(x_ref, wl_ref, bl_ref, wr_ref, br_ref, hl_ref, hr_ref):
    x = x_ref[...]
    hl_ref[...] = (jnp.dot(x, wl_ref[...], preferred_element_type=jnp.float32)
                   + bl_ref[...])
    hr_ref[...] = (jnp.dot(x, wr_ref[...], preferred_element_type=jnp.float32)
                   + br_ref[...])


# ---------------------------------------------------------------------------
# Kernel 2: masked GATv2 attention + aggregation with online softmax over
# source-node tiles (flash-attention style).
# grid = (num_target_tiles [parallel], num_source_tiles [arbitrary])
# ---------------------------------------------------------------------------
def _attn_kernel(hr_ref, hl_ref, adj_ref, att_ref, bias_ref, out_ref,
                 m_sc, l_sc, acc_sc):
    j = pl.program_id(1)

    @pl.when(j == 0)
    def _():
        m_sc[...] = jnp.full(m_sc.shape, MASK_VALUE, jnp.float32)
        l_sc[...] = jnp.zeros(l_sc.shape, jnp.float32)
        acc_sc[...] = jnp.zeros(acc_sc.shape, jnp.float32)

    hr = hr_ref[...]                  # (TI, C)  target projections
    hl = hl_ref[...]                  # (TJ, C)  source projections
    adj = adj_ref[...]                # (TI, TJ) 1.0 where edge j->i (incl. self loop)
    att = att_ref[...]                # (1, C)

    # GATv2 logits: e[i, j] = att . LeakyReLU(h_r[i] + h_l[j])
    z = hr[:, None, :] + hl[None, :, :]                       # (TI, TJ, C)
    z = jnp.where(z >= 0, z, NEG_SLOPE * z)
    s = jnp.sum(z * att[None, :, :], axis=-1)                 # (TI, TJ)
    s = jnp.where(adj > 0, s, MASK_VALUE)

    # online softmax update (numerator / denominator accumulators in f32 VMEM)
    m_prev = m_sc[...]
    m_new = jnp.maximum(m_prev, jnp.max(s, axis=-1, keepdims=True))   # (TI, 1)
    corr = jnp.exp(m_prev - m_new)
    p = jnp.exp(s - m_new) * adj                               # exact 0 for non-edges
    l_sc[...] = corr * l_sc[...] + jnp.sum(p, axis=-1, keepdims=True)
    acc_sc[...] = corr * acc_sc[...] + jnp.dot(
        p, hl, preferred_element_type=jnp.float32)
    m_sc[...] = m_new

    @pl.when(j == pl.num_programs(1) - 1)
    def _():
        l = l_sc[...]
        inv_l = jnp.where(l > 0, 1.0 / l, 0.0)   # padded rows (no edges) -> 0
        out_ref[...] = (acc_sc[...] * inv_l + bias_ref[...]).astype(out_ref.dtype)


# ---------------------------------------------------------------------------
# Wrapper
# ---------------------------------------------------------------------------
def gatv2_conv(x, edge_index, w_l, b_l, w_r, b_r, att, bias, *, ti=64, tj=128):
    """GATv2Conv forward (heads=1, concat=True, add_self_loops=True).

    x:          (N, Din) f32 node features
    edge_index: (2, E) int32, row 0 = source j, row 1 = target i
    w_l, w_r:   (Dout, Din)  torch nn.Linear weight layout
    b_l, b_r, att, bias: (Dout,)
    returns:    (N, Dout) f32
    """
    n, din = x.shape
    dout = w_l.shape[0]

    n_p = _round_up(n, max(ti, tj))
    din_p = _round_up(din, LANE)
    dout_p = _round_up(dout, LANE)
    f32 = jnp.float32

    # Lane-dense padding of features / parameters (padded channels are zero so
    # they contribute nothing to logits or outputs).
    x_p = jnp.zeros((n_p, din_p), f32).at[:n, :din].set(x.astype(f32))
    wlT = jnp.zeros((din_p, dout_p), f32).at[:din, :dout].set(w_l.T.astype(f32))
    wrT = jnp.zeros((din_p, dout_p), f32).at[:din, :dout].set(w_r.T.astype(f32))
    bl = jnp.zeros((1, dout_p), f32).at[0, :dout].set(b_l.astype(f32))
    br = jnp.zeros((1, dout_p), f32).at[0, :dout].set(b_r.astype(f32))
    attp = jnp.zeros((1, dout_p), f32).at[0, :dout].set(att.astype(f32))
    biasp = jnp.zeros((1, dout_p), f32).at[0, :dout].set(bias.astype(f32))

    # Dense adjacency mask adj[i, j] = 1 iff edge j -> i. PyG removes existing
    # self loops and re-adds one per node, which for a dense mask is simply
    # "set the diagonal for real nodes".
    # TODO(synk): duplicate edges in edge_index collapse to one entry here;
    # PyG's edge-list softmax would count them separately (rare in practice).
    src, dst = edge_index[0], edge_index[1]
    adj = jnp.zeros((n_p, n_p), f32).at[dst, src].set(1.0)
    diag = jnp.arange(n)
    adj = adj.at[diag, diag].set(1.0)

    # --- projections (tiled over node rows, pipelined, MXU) ---
    tm = ti
    hl_p, hr_p = pl.pallas_call(
        _proj_kernel,
        out_shape=(jax.ShapeDtypeStruct((n_p, dout_p), f32),
                   jax.ShapeDtypeStruct((n_p, dout_p), f32)),
        grid_spec=pltpu.PrefetchScalarGridSpec(
            num_scalar_prefetch=0,
            grid=(n_p // tm,),
            in_specs=[
                pl.BlockSpec((tm, din_p), lambda m: (m, 0)),
                pl.BlockSpec((din_p, dout_p), lambda m: (0, 0)),   # W_l (resident)
                pl.BlockSpec((1, dout_p), lambda m: (0, 0)),       # b_l
                pl.BlockSpec((din_p, dout_p), lambda m: (0, 0)),   # W_r (resident)
                pl.BlockSpec((1, dout_p), lambda m: (0, 0)),       # b_r
            ],
            out_specs=[
                pl.BlockSpec((tm, dout_p), lambda m: (m, 0)),
                pl.BlockSpec((tm, dout_p), lambda m: (m, 0)),
            ]),
        compiler_params=pltpu.CompilerParams(
            dimension_semantics=("parallel",),
            vmem_limit_bytes=VMEM_LIMIT),
    )(x_p, wlT, bl, wrT, br)

    # --- attention + aggregation (flash-style over source tiles) ---
    out_p = pl.pallas_call(
        _attn_kernel,
        out_shape=jax.ShapeDtypeStruct((n_p, dout_p), f32),
        grid_spec=pltpu.PrefetchScalarGridSpec(
            num_scalar_prefetch=0,
            grid=(n_p // ti, n_p // tj),
            in_specs=[
                pl.BlockSpec((ti, dout_p), lambda i, j: (i, 0)),   # h_r target tile
                pl.BlockSpec((tj, dout_p), lambda i, j: (j, 0)),   # h_l source tile
                pl.BlockSpec((ti, tj), lambda i, j: (i, j)),       # adjacency tile
                pl.BlockSpec((1, dout_p), lambda i, j: (0, 0)),    # att (resident)
                pl.BlockSpec((1, dout_p), lambda i, j: (0, 0)),    # bias (resident)
            ],
            out_specs=pl.BlockSpec((ti, dout_p), lambda i, j: (i, 0)),
            scratch_shapes=[
                pltpu.VMEM((ti, 1), f32),        # running max
                pltpu.VMEM((ti, 1), f32),        # running softmax denominator
                pltpu.VMEM((ti, dout_p), f32),   # running numerator (aggregation)
            ]),
        compiler_params=pltpu.CompilerParams(
            dimension_semantics=("parallel", "arbitrary"),
            vmem_limit_bytes=VMEM_LIMIT),
    )(hr_p, hl_p, adj, attp, biasp)

    return out_p[:n, :dout]


# ---------------------------------------------------------------------------
# Pure-JAX reference (edge-list formulation, mirrors PyG GATv2Conv defaults)
# ---------------------------------------------------------------------------
def gatv2_conv_ref(x, edge_index, w_l, b_l, w_r, b_r, att, bias):
    n = x.shape[0]
    hl = x @ w_l.T + b_l
    hr = x @ w_r.T + b_r
    # add self loops (demo graph is built without self loops)
    src = jnp.concatenate([edge_index[0], jnp.arange(n)])
    dst = jnp.concatenate([edge_index[1], jnp.arange(n)])
    z = hr[dst] + hl[src]
    z = jnp.where(z >= 0, z, NEG_SLOPE * z)
    e = jnp.sum(z * att[None, :], axis=-1)
    e_max = jnp.full((n,), -jnp.inf).at[dst].max(e)
    p = jnp.exp(e - e_max[dst])
    denom = jnp.zeros((n,)).at[dst].add(p)
    alpha = p / denom[dst]
    out = jnp.zeros_like(hl).at[dst].add(alpha[:, None] * hl[src])
    return out + bias[None, :]


if __name__ == "__main__":
    key = jax.random.PRNGKey(0)
    ks = jax.random.split(key, 8)

    num_nodes, dim_in, dim_out = 16, 32, 32   # heads=1 (PyG default)

    x = jax.random.normal(ks[0], (num_nodes, dim_in), dtype=jnp.float32)
    w_l = jax.random.normal(ks[1], (dim_out, dim_in), jnp.float32) / jnp.sqrt(dim_in)
    b_l = 0.1 * jax.random.normal(ks[2], (dim_out,), jnp.float32)
    w_r = jax.random.normal(ks[3], (dim_out, dim_in), jnp.float32) / jnp.sqrt(dim_in)
    b_r = 0.1 * jax.random.normal(ks[4], (dim_out,), jnp.float32)
    att = jax.random.normal(ks[5], (dim_out,), jnp.float32) / jnp.sqrt(dim_out)
    bias = 0.1 * jax.random.normal(ks[6], (dim_out,), jnp.float32)

    # deterministic random directed graph, no self loops, no duplicate edges
    emask = jax.random.bernoulli(ks[7], 0.3, (num_nodes, num_nodes))
    emask = jnp.logical_and(emask, ~jnp.eye(num_nodes, dtype=bool))
    src, dst = jnp.nonzero(emask)                     # edge src -> dst
    edge_index = jnp.stack([src, dst]).astype(jnp.int32)
    # TODO(synk): edge_attr / lin_edge path (edge_dim != None) not implemented;
    # default GATv2Conv ignores edge_attr, matching this kernel.

    out = gatv2_conv(x, edge_index, w_l, b_l, w_r, b_r, att, bias)
    out = jax.block_until_ready(out)

    ref = gatv2_conv_ref(x, edge_index, w_l, b_l, w_r, b_r, att, bias)
    assert out.shape == (num_nodes, dim_out) and out.dtype == x.dtype
    # tolerance accounts for MXU vs XLA f32 matmul precision differences
    assert jnp.allclose(out, ref, atol=1e-2, rtol=1e-2), (
        "mismatch vs reference: max abs err "
        f"{jnp.max(jnp.abs(out - ref)):.3e}")

    print("KERNEL_OK")
</pallas_src>

<mosaic_0001>
module attributes {stable_mosaic.version = 11 : i64} {
  func.func @_proj_kernel(%arg0: i32, %arg1: memref<64x128xf32, #tpu.memory_space<vmem>>, %arg2: memref<128x128xf32, #tpu.memory_space<vmem>>, %arg3: memref<1x128xf32, #tpu.memory_space<vmem>>, %arg4: memref<128x128xf32, #tpu.memory_space<vmem>>, %arg5: memref<1x128xf32, #tpu.memory_space<vmem>>, %arg6: memref<64x128xf32, #tpu.memory_space<vmem>>, %arg7: memref<64x128xf32, #tpu.memory_space<vmem>>) attributes {dimension_semantics = [#tpu.dimension_semantics<parallel>], iteration_bounds = array<i64: 2>, scalar_prefetch = 0 : i64, scratch_operands = 0 : i64, tpu.core_type = #tpu.core_type<tc>, window_params = [{transform_indices = @transform_0, window_bounds = array<i64: 64, 128>}, {pipeline_mode = #tpu.pipeline_mode<synchronous>, transform_indices = @transform_1, window_bounds = array<i64: 128, 128>}, {pipeline_mode = #tpu.pipeline_mode<synchronous>, transform_indices = @transform_2, window_bounds = array<i64: 1, 128>}, {pipeline_mode = #tpu.pipeline_mode<synchronous>, transform_indices = @transform_3, window_bounds = array<i64: 128, 128>}, {pipeline_mode = #tpu.pipeline_mode<synchronous>, transform_indices = @transform_4, window_bounds = array<i64: 1, 128>}, {transform_indices = @transform_5, window_bounds = array<i64: 64, 128>}, {transform_indices = @transform_6, window_bounds = array<i64: 64, 128>}]} {
    %c0 = arith.constant 0 : index
    %c0_0 = arith.constant 0 : index
    %0 = vector.load %arg1[%c0, %c0_0] : memref<64x128xf32, #tpu.memory_space<vmem>>, vector<64x128xf32>
    %c0_1 = arith.constant 0 : index
    %c0_2 = arith.constant 0 : index
    %1 = vector.load %arg2[%c0_1, %c0_2] : memref<128x128xf32, #tpu.memory_space<vmem>>, vector<128x128xf32>
    %cst = arith.constant dense<0.000000e+00> : vector<64x128xf32>
    %2 = tpu.matmul %0, %1, %cst {dimension_numbers = #tpu.dot_dimension_numbers<[1], [0], [0], [1], [0, 0, 1, 1], [], []>} : vector<64x128xf32>, vector<128x128xf32>, vector<64x128xf32> -> vector<64x128xf32>
    %c0_3 = arith.constant 0 : index
    %c0_4 = arith.constant 0 : index
    %3 = vector.load %arg3[%c0_3, %c0_4] : memref<1x128xf32, #tpu.memory_space<vmem>>, vector<1x128xf32>
    %4 = vector.broadcast %3 : vector<1x128xf32> to vector<64x128xf32>
    %5 = arith.addf %2, %4 : vector<64x128xf32>
    %c0_5 = arith.constant 0 : index
    %c0_6 = arith.constant 0 : index
    %6 = vector.load %arg6[%c0_5, %c0_6] : memref<64x128xf32, #tpu.memory_space<vmem>>, vector<64x128xf32>
    tpu.vector_store %arg6[%c0_5, %c0_6], %5 {strides = array<i32>} : memref<64x128xf32, #tpu.memory_space<vmem>>, vector<64x128xf32>,
    %c0_7 = arith.constant 0 : index
    %c0_8 = arith.constant 0 : index
    %7 = vector.load %arg4[%c0_7, %c0_8] : memref<128x128xf32, #tpu.memory_space<vmem>>, vector<128x128xf32>
    %cst_9 = arith.constant dense<0.000000e+00> : vector<64x128xf32>
    %8 = tpu.matmul %0, %7, %cst_9 {dimension_numbers = #tpu.dot_dimension_numbers<[1], [0], [0], [1], [0, 0, 1, 1], [], []>} : vector<64x128xf32>, vector<128x128xf32>, vector<64x128xf32> -> vector<64x128xf32>
    %c0_10 = arith.constant 0 : index
    %c0_11 = arith.constant 0 : index
    %9 = vector.load %arg5[%c0_10, %c0_11] : memref<1x128xf32, #tpu.memory_space<vmem>>, vector<1x128xf32>
    %10 = vector.broadcast %9 : vector<1x128xf32> to vector<64x128xf32>
    %11 = arith.addf %8, %10 : vector<64x128xf32>
    %c0_12 = arith.constant 0 : index
    %c0_13 = arith.constant 0 : index
    %12 = vector.load %arg7[%c0_12, %c0_13] : memref<64x128xf32, #tpu.memory_space<vmem>>, vector<64x128xf32>
    tpu.vector_store %arg7[%c0_12, %c0_13], %11 {strides = array<i32>} : memref<64x128xf32, #tpu.memory_space<vmem>>, vector<64x128xf32>,
    return
  }
  func.func @transform_0(%arg0: i32) -> (i32, i32) {
    %c0_i32 = arith.constant 0 : i32
    %c0_i32_0 = arith.constant 0 : i32
    return %arg0, %c0_i32 : i32, i32
  }
  func.func @transform_1(%arg0: i32) -> (i32, i32) {
    %c0_i32 = arith.constant 0 : i32
    %c0_i32_0 = arith.constant 0 : i32
    %c0_i32_1 = arith.constant 0 : i32
    return %c0_i32, %c0_i32_0 : i32, i32
  }
  func.func @transform_2(%arg0: i32) -> (i32, i32) {
    %c0_i32 = arith.constant 0 : i32
    %c0_i32_0 = arith.constant 0 : i32
    %c0_i32_1 = arith.constant 0 : i32
    return %c0_i32, %c0_i32_0 : i32, i32
  }
  func.func @transform_3(%arg0: i32) -> (i32, i32) {
    %c0_i32 = arith.constant 0 : i32
    %c0_i32_0 = arith.constant 0 : i32
    %c0_i32_1 = arith.constant 0 : i32
    return %c0_i32, %c0_i32_0 : i32, i32
  }
  func.func @transform_4(%arg0: i32) -> (i32, i32) {
    %c0_i32 = arith.constant 0 : i32
    %c0_i32_0 = arith.constant 0 : i32
    %c0_i32_1 = arith.constant 0 : i32
    return %c0_i32, %c0_i32_0 : i32, i32
  }
  func.func @transform_5(%arg0: i32) -> (i32, i32) {
    %c0_i32 = arith.constant 0 : i32
    %c0_i32_0 = arith.constant 0 : i32
    return %arg0, %c0_i32 : i32, i32
  }
  func.func @transform_6(%arg0: i32) -> (i32, i32) {
    %c0_i32 = arith.constant 0 : i32
    %c0_i32_0 = arith.constant 0 : i32
    return %arg0, %c0_i32 : i32, i32
  }
}

</mosaic_0001>

<bundles_post_ra>
// kernel: tpu_custom_call.1
= control target key start
LH: loop header
LB: loop body
LE: loop exit
PB: predicated region body
PF: predicated region fallthrough
CT: control target
= control target key end

     0   :  { %12 = vsyncpa [#allocation3], 0  ;;  %s1489_s0 = inlined_call_operand.hbm [shape: f32[128,128], index: 0, kind: input, shape index: {}]   ;;  %s1490_s1 = inlined_call_operand.hbm [shape: f32[128,128], index: 1, kind: input, shape index: {}]   ;;  %s1491_s2 = inlined_call_operand.vmem [shape: f32[1,128], index: 2, kind: input, shape index: {}]   ;;  %s1492_s3 = inlined_call_operand.hbm [shape: f32[128,128], index: 3, kind: input, shape index: {}]   ;;  %s1493_s4 = inlined_call_operand.vmem [shape: f32[1,128], index: 4, kind: input, shape index: {}]   ;;  %s1494_s5 = inlined_call_operand.hbm [shape: f32[128,128], index: 5, kind: output, shape index: {0}]   ;;  %s1495_s6 = inlined_call_operand.hbm [shape: f32[128,128], index: 6, kind: output, shape index: {1}]  }
   0x1   :  { %14 = vsyncpa [#allocation3 + $0x1], 0 }
   0x2   :  { %15 = vsyncpa [#allocation6], 0 }
   0x3   :  { %16 = vsyncpa [#allocation4], 0 }
   0x4   :  { %18 = vsyncpa [#allocation4 + $0x1], 0 }
   0x5   :  { %19 = vsyncpa [#allocation10], 0 }
   0x6   :  { %21 = vsyncpa [#allocation10 + $0x1], 0  ;;  %s1215_s21 = smov 0   ;;  %s1217_s22 = smov 0  }
   0x7   :  { %s1219_s23 = smov 0   ;;  %s1221_s24 = smov 0  }
   0x8 LB: > { %s1236_s25 = sadd.s32 4294967295, %s1169_s24   ;;  %s752_s26 = sadd.s32 4294967294, %s1169_s24   ;;  %s1169_s24 = sphi %s1221_s24, %s1520_s24   ;;  %s1165_s23 = sphi %s1219_s23, %s1519_s23   ;;  %s1161_s22 = sphi %s1217_s22, %s1518_s22   ;;  %s1157_s21 = sphi %s1215_s21, %s1517_s21  }
   0x9   : > { %p47_p0 = scmp.ne.s32.totalorder %s1161_s22, %s1157_s21  ;;  %p1496_p1 = scmp.eq.s32.totalorder %s1236_s25, 0 }
   0xa   : > { %p155_p2 = scmp.eq.s32.totalorder %s1236_s25, 1  ;;  %p161_p3 = scmp.eq.s32.totalorder %s752_s26, 1 }
   0xb   : > { %p1245_p4 = por %p1496_p1, %p47_p0  ;;  %p753_p5 = scmp.ge.s32.totalorder %s1169_s24, 1 }
   0xc   : > { %p1250_p6 = por %p161_p3, %p47_p0  ;;  %p194_p7 = scmp.lt.s32.totalorder %s1169_s24, 3 }
   0xd   : > { %s1502_s27 = scalar_select %p1245_p4, 1, 0 }
   0xe   : > { %s1503_s28 = scalar_select %p1250_p6, 1, 0 }
   0xf   : > { %p1255_p8 = pnand %p753_p5, %p194_p7  ;;  %s1171_s30 = smov [#allocation5]  }
  0x10   : > { %s206_s7 = sshll.u32 %s1171_s30, 4  ;;  %s1172_s9 = smov [#allocation7]   ;;  %s207_s7 = int_to_ptr.vmem [resolvable:$true] %s206_s7 }
  0x11   : > { %s1504_s29 = scalar_select %p1255_p8, 1, 0 }
  0x12   : > { %p929_p9 = pneg %p1255_p8  ;;  %s222_s10 = sshll.u32 %s1172_s9, 4  ;;  %s223_s10 = int_to_ptr.vmem [resolvable:$true] %s222_s10 }
  0x13   : > { %s1002_s11 = scalar_lea.vmem %s207_s7, 2048  ;;  %p1010_p5 = scmp.lt.s32.totalorder %s207_s7, %s207_s7 }
  0x14   : > { %p1264_p11 = pnand %p929_p9, %p1496_p1  ;;  %p1003_p13 = scmp.ne.s32.totalorder %s207_s7, %s1002_s11 }
  0x15   : > { %p1011_p7 = scmp.lt.s32.totalorder %s1002_s11, %s1002_s11 }
  0x16   : > { %p993_p12 = pneg %p1264_p11 }
  0x17   : > { %p1012_p10 = por %p1011_p7, %p1010_p5 }
  0x18   : > { %p1005_p0 = pnand %p1003_p13, %p993_p12 }
  0x1a   : > { %p1006_p3 = pneg %p1005_p0 }
  0x1c   : > { %p1013_p9 = pnand %p1012_p10, %p1006_p3 }
  0x1e   : > { %1016 = shalt.err (!%p1013_p9)
}
  0x1f   : > { %s1497_s12 = smov 128   ;;  %s1498_s13 = smov 8  }
  0x20   : > { %932 = dma.hbm_to_vmem [thread:$0]  (!%p1264_p11), %s1490_s1, 2048, %s207_s7, [#allocation6], %s1497_s12, %s1497_s12, %s1498_s13  }
  0x21   : > { %s1028_s16 = scalar_lea.vmem %s223_s10, 2048  ;;  %p1036_p10 = scmp.lt.s32.totalorder %s223_s10, %s223_s10 }
  0x22   : > { %p1029_p13 = scmp.ne.s32.totalorder %s223_s10, %s1028_s16  ;;  %p1037_p3 = scmp.lt.s32.totalorder %s1028_s16, %s1028_s16 }
  0x24   : > { %p1031_p0 = pnand %p1029_p13, %p993_p12  ;;  %p1038_p7 = por %p1037_p3, %p1036_p10 }
  0x26   : > { %p1032_p5 = pneg %p1031_p0 }
  0x28   : > { %p1039_p9 = pnand %p1038_p7, %p1032_p5 }
  0x2a   : > { %1042 = shalt.err (!%p1039_p9)
}
  0x2b   : > { %935 = dma.hbm_to_vmem [thread:$0]  (!%p1264_p11), %s1492_s3, 2048, %s223_s10, [#allocation6], %s1497_s12, %s1497_s12, %s1498_s13  }
  0x2c   : > { %s1293_s19 = sadd.s32 1, %s1169_s24   ;;  %s34_s20 = sadd.s32 1, %s1165_s23 }
  0x2d   : > { %s31_s26 = ssub.s32 %s1169_s24, %s1293_s19  ;;  %p41_p12 = scmp.ne.s32.totalorder %s1165_s23, %s1161_s22 }
  0x2e   : > { %p32_p13 = scmp.eq.s32.totalorder %s31_s26, 0  ;;  %p42_p0 = scmp.eq.s32.totalorder %s1169_s24, 0 }
  0x2f   : > { %p1303_p5 = por %p155_p2, %p41_p12  ;;  %p949_p10 = scmp.lt.s32.totalorder %s1169_s24, 2 }
  0x30   : > { %s1309_s7 = scalar_select %p32_p13, %s1165_s23, %s34_s20  }
  0x31   : > { %s1506_s30 = scalar_select %p1303_p5, 1, 0 }
  0x32   : > { %p43_p3 = por %p42_p0, %p41_p12  ;;  %s239_s8 = sand.u32 1, %s1165_s23  }
  0x33   : > { %s757_s9 = sshll.u32 %s239_s8, 6  ;;  %s776_s10 = sshll.u32 %s1169_s24, 10 }
  0x34   : > { %s1316_s15 = scalar_lea.hbm %s1489_s0, %s776_s10  ;;  %s243_s16 = scalar_lea.vmem [#allocation2], %s757_s9 }
  0x35   : > { %s250_s17 = sshll.u32 %s243_s16, 4  ;;  %p1320_p2 = pnand %p949_p10, %p43_p3  ;;  %s1318_s17 = int_to_ptr.vmem [resolvable:$true] %s250_s17 }
  0x36   : > { %s1324_s20 = scalar_lea.sflag [#allocation3], %s239_s8  ;;  %s1043_s26 = scalar_lea.hbm %s1316_s15, 1024 }
  0x37   : > { %p1044_p11 = scmp.ne.s32.totalorder %s1316_s15, %s1043_s26  ;;  %p1045_p7 = pneg %p1320_p2 }
  0x38   : > { %s1048_s9 = scalar_lea.hbm %s1489_s0, 2048  ;;  %p1049_p13 = scmp.lt.s32.totalorder %s1316_s15, %s1489_s0 }
  0x39   : > { %p1046_p9 = pnand %p1045_p7, %p1044_p11  ;;  %p1050_p0 = scmp.lt.s32.totalorder %s1048_s9, %s1043_s26 }
  0x3b   : > { %p1047_p12 = pneg %p1046_p9  ;;  %p1051_p10 = por %p1050_p0, %p1049_p13 }
  0x3d   : > { %p1052_p3 = pnand %p1051_p10, %p1047_p12 }
  0x3f   : > { %1055 = shalt.err (!%p1052_p3)
}
  0x40   : > { %s1056_s8 = scalar_lea.vmem %s1318_s17, 1024  ;;  %s1175_s12 = smov [#allocation2]  }
  0x41   : > { %p1057_p1 = scmp.ne.s32.totalorder %s1318_s17, %s1056_s8  ;;  %s1061_s13 = sshll.u32 %s1175_s12, 4  ;;  %s1062_s13 = int_to_ptr.vmem [resolvable:$false] %s1061_s13 }
  0x42   : > { %s1063_s10 = scalar_lea.vmem %s1062_s13, 2048  ;;  %p1064_p9 = scmp.lt.s32.totalorder %s1318_s17, %s1062_s13 }
  0x43   : > { %p1059_p6 = pnand %p1057_p1, %p1045_p7  ;;  %p1065_p5 = scmp.lt.s32.totalorder %s1063_s10, %s1056_s8 }
  0x45   : > { %p1060_p11 = pneg %p1059_p6  ;;  %p1066_p4 = por %p1065_p5, %p1064_p9 }
  0x47   : > { %p1067_p8 = pnand %p1066_p4, %p1060_p11 }
  0x49   : > { %1070 = shalt.err (!%p1067_p8)
}
  0x4a   : > { %s1508_s26 = smov 8   ;;  %s1509_s11 = smov 128  }
  0x4b   : > { %939 = dma.hbm_to_vmem [thread:$0]  (!%p1320_p2), %s1316_s15, 1024, %s1318_s17, %s1324_s20, %s1509_s11, %s1509_s11, %s1508_s26  }
  0x4c   : > { %p1510_p1 = scmp.ne.s32.totalorder %s1504_s29, 0 }
  0x4d   : > { %s1351_s12 = sand.u32 (!%p1510_p1), 1, %s1161_s22   ;;  %p1511_p4 = scmp.ne.s32.totalorder (!%p1510_p1), %s1502_s27, 0 }
  0x4e   : > { %262 = sbr.rel (%p1510_p1) target bundleno = 367 (0x16f), region = 40  ;;  %s1354_s13 = sshll.u32 (!%p1510_p1), %s1351_s12, 6 }
  0x4f   : > { %s265_s18 = scalar_lea.sflag (!%p1510_p1), [#allocation3], %s1351_s12  ;;  %s1358_s9 = scalar_lea.vmem (!%p1510_p1), [#allocation2], %s1354_s13 }
  0x53   : > { %1140 = dma.done.wait (%p1511_p4), %s265_s18, 1024  }
  0x54   : > { %1142 = vsyncadd (%p1511_p4), %s265_s18, 4294966272  ;;  %p1512_p6 = scmp.eq.s32.totalorder %s1236_s25, 0 }
  0x56   : > { %1144 = dma.done.wait (%p1512_p6), [#allocation6], 4096   ;;  %p1513_p8 = pmov %p1512_p6 }
  0x57   : > { %v336_v0 = vld [vmem:[#allocation5 + $0x78] sm:$0xff]  ;;  %v335_v2 = vld [vmem:[#allocation5 + $0x70] sm:$0xff]  ;;  %v334_v4 = vld [vmem:[#allocation5 + $0x68] sm:$0xff]  ;;  %s1383_s20 = scalar_lea.vmem [#allocation8], %s1354_s13  ;;  %s1387_s14 = scalar_lea.vmem [#allocation9], %s1354_s13 }
  0x58   : > { %1146 = vsyncadd (%p1513_p8), [#allocation6], 4294963200  ;;  %v472_v1 = vld [vmem:[#allocation7 + $0x78] sm:$0xff]  ;;  %827 = vmatprep.subr.mxu0 %v336_v0  ;;  %v471_v3 = vld [vmem:[#allocation7 + $0x70] sm:$0xff]  ;;  %s612_s16 = sshll.u32 %s1383_s20, 4  ;;  %s628_s8 = sshll.u32 %s1387_s14, 4  ;;  %s1401_s16 = int_to_ptr.vmem [resolvable:$true] %s612_s16  ;;  %s1403_s8 = int_to_ptr.vmem [resolvable:$true] %s628_s8 }
  0x59   : > { %871 = vmatprep.subr.mxu1 %v472_v1  ;;  %828 = vmatpush3.msra.mxu0 %v336_v0  ;;  %v470_v5 = vld [vmem:[#allocation7 + $0x68] sm:$0xff]  ;;  %v333_v6 = vld [vmem:[#allocation5 + $0x60] sm:$0xff]  ;;  %v332_v8 = vld [vmem:[#allocation5 + $0x58] sm:$0xff]  ;;  %s777_s10 = sshll.u32 %s1236_s25, 10  ;;  %s594_s27 = scalar_lea.sflag [#allocation4], %s1351_s12 }
  0x5a   : > { %872 = vmatpush3.msra.mxu1 %v472_v1  ;;  %829 = vmatprep.subr.mxu0 %v335_v2  ;;  %v469_v7 = vld [vmem:[#allocation7 + $0x60] sm:$0xff]  ;;  %v468_v9 = vld [vmem:[#allocation7 + $0x58] sm:$0xff]  ;;  %v331_v10 = vld [vmem:[#allocation5 + $0x50] sm:$0xff]  ;;  %s1410_s11 = scalar_lea.hbm %s1494_s5, %s777_s10  ;;  %s1071_s29 = scalar_lea.vmem %s1401_s16, 1024 }
  0x5b   : > { %873 = vmatprep.subr.mxu1 %v471_v3  ;;  %830 = vmatpush3.msra.mxu0 %v335_v2  ;;  %v467_v11 = vld [vmem:[#allocation7 + $0x50] sm:$0xff]  ;;  %v330_v12 = vld [vmem:[#allocation5 + $0x48] sm:$0xff]  ;;  %v329_v14 = vld [vmem:[#allocation5 + $0x40] sm:$0xff]  ;;  %p1072_p5 = scmp.ne.s32.totalorder %s1401_s16, %s1071_s29  ;;  %p1514_p2 = scmp.ne.s32.totalorder %s1506_s30, 0 }
  0x5c   : > { %874 = vmatpush3.msra.mxu1 %v471_v3  ;;  %831 = vmatprep.subr.mxu0 %v334_v4  ;;  %v466_v13 = vld [vmem:[#allocation7 + $0x48] sm:$0xff]  ;;  %v465_v15 = vld [vmem:[#allocation7 + $0x40] sm:$0xff]  ;;  %v328_v16 = vld [vmem:[#allocation5 + $0x38] sm:$0xff]  ;;  %s1176_s15 = smov [#allocation8]  }
  0x5d   : > { %875 = vmatprep.subr.mxu1 %v470_v5  ;;  %832 = vmatpush3.msra.mxu0 %v334_v4  ;;  %v464_v17 = vld [vmem:[#allocation7 + $0x38] sm:$0xff]  ;;  %v327_v18 = vld [vmem:[#allocation5 + $0x30] sm:$0xff]  ;;  %v326_v20 = vld [vmem:[#allocation5 + $0x28] sm:$0xff]  ;;  %p1073_p7 = pnand %p1072_p5, %p1514_p2  ;;  %s1075_s17 = sshll.u32 %s1176_s15, 4  ;;  %s1076_s17 = int_to_ptr.vmem [resolvable:$false] %s1075_s17 }
  0x5e   : > { %876 = vmatpush3.msra.mxu1 %v470_v5  ;;  %833 = vmatprep.subr.mxu0 %v333_v6  ;;  %v463_v19 = vld [vmem:[#allocation7 + $0x30] sm:$0xff]  ;;  %v462_v21 = vld [vmem:[#allocation7 + $0x28] sm:$0xff]  ;;  %v325_v22 = vld [vmem:[#allocation5 + $0x20] sm:$0xff]  ;;  %s1077_s26 = scalar_lea.vmem %s1076_s17, 2048  ;;  %p1078_p13 = scmp.lt.s32.totalorder %s1401_s16, %s1076_s17 }
  0x5f   : > { %877 = vmatprep.subr.mxu1 %v469_v7  ;;  %834 = vmatpush3.msra.mxu0 %v333_v6  ;;  %v461_v23 = vld [vmem:[#allocation7 + $0x20] sm:$0xff]  ;;  %v324_v24 = vld [vmem:[#allocation5 + $0x18] sm:$0xff]  ;;  %v323_v26 = vld [vmem:[#allocation5 + $0x10] sm:$0xff]  ;;  %p1074_p12 = pneg %p1073_p7  ;;  %p1079_p0 = scmp.lt.s32.totalorder %s1077_s26, %s1071_s29 }
  0x60   : > { %878 = vmatpush3.msra.mxu1 %v469_v7  ;;  %835 = vmatprep.subr.mxu0 %v332_v8  ;;  %v460_v25 = vld [vmem:[#allocation7 + $0x18] sm:$0xff]  ;;  %v459_v27 = vld [vmem:[#allocation7 + $0x10] sm:$0xff]  ;;  %v322_v28 = vld [vmem:[#allocation5 + $0x8] sm:$0xff] }
  0x61   : > { %879 = vmatprep.subr.mxu1 %v468_v9  ;;  %836 = vmatpush3.msra.mxu0 %v332_v8  ;;  %v458_v29 = vld [vmem:[#allocation7 + $0x8] sm:$0xff]  ;;  %v321_v30 = vld [vmem:[#allocation5] sm:$0xff]  ;;  %v315_v34 = vld [vmem:[%s1358_s9 + $0x10] sm:$0xff]  ;;  %p1080_p10 = por %p1079_p0, %p1078_p13 }
  0x62   : > { %880 = vmatpush3.msra.mxu1 %v468_v9  ;;  %837 = vmatprep.subr.mxu0 %v331_v10  ;;  %v457_v31 = vld [vmem:[#allocation7] sm:$0xff]  ;;  %v314_v33 = vld [vmem:[%s1358_s9 + $0x8] sm:$0xff]  ;;  %v316_v35 = vld [vmem:[%s1358_s9 + $0x18] sm:$0xff] }
  0x63   : > { %881 = vmatprep.subr.mxu1 %v467_v11  ;;  %838 = vmatpush3.msra.mxu0 %v331_v10  ;;  %v313_v32 = vld [vmem:[%s1358_s9] sm:$0xff]  ;;  %v318_v37 = vld [vmem:[%s1358_s9 + $0x28] sm:$0xff]  ;;  %v319_v38 = vld [vmem:[%s1358_s9 + $0x30] sm:$0xff]  ;;  %p1081_p3 = pnand %p1080_p10, %p1074_p12 }
  0x64   : > { %882 = vmatpush3.msra.mxu1 %v467_v11  ;;  %839 = vmatprep.subr.mxu0 %v330_v12  ;;  %v317_v36 = vld [vmem:[%s1358_s9 + $0x20] sm:$0xff]  ;;  %v320_v39 = vld [vmem:[%s1358_s9 + $0x38] sm:$0xff]  ;;  %s1417_s9 = scalar_lea.hbm %s1495_s6, %s777_s10 }
  0x65   : > { %883 = vmatprep.subr.mxu1 %v466_v13  ;;  %840 = vmatpush3.msra.mxu0 %v330_v12  ;;  %v766_v40 = vld [vmem:[%s1491_s2] ss:$0 sm:$0xff] }
  0x66   : > { %884 = vmatpush3.msra.mxu1 %v466_v13  ;;  %841 = vmatprep.subr.mxu0 %v329_v14  ;;  %v767_v41 = vld [vmem:[%s1493_s4] ss:$0 sm:$0xff] }
  0x67   : > { %885 = vmatprep.subr.mxu1 %v465_v15  ;;  %842 = vmatpush3.msra.mxu0 %v329_v14 }
  0x68   : > { %886 = vmatpush3.msra.mxu1 %v465_v15  ;;  %843 = vmatprep.subr.mxu0 %v328_v16 }
  0x69   : > { %887 = vmatprep.subr.mxu1 %v464_v17  ;;  %844 = vmatpush3.msra.mxu0 %v328_v16 }
  0x6a   : > { %888 = vmatpush3.msra.mxu1 %v464_v17  ;;  %845 = vmatprep.subr.mxu0 %v327_v18 }
  0x6b   : > { %889 = vmatprep.subr.mxu1 %v463_v19  ;;  %846 = vmatpush3.msra.mxu0 %v327_v18 }
  0x6c   : > { %890 = vmatpush3.msra.mxu1 %v463_v19  ;;  %847 = vmatprep.subr.mxu0 %v326_v20 }
  0x6d   : > { %891 = vmatprep.subr.mxu1 %v462_v21  ;;  %848 = vmatpush3.msra.mxu0 %v326_v20 }
  0x6e   : > { %892 = vmatpush3.msra.mxu1 %v462_v21  ;;  %849 = vmatprep.subr.mxu0 %v325_v22 }
  0x6f   : > { %893 = vmatprep.subr.mxu1 %v461_v23  ;;  %850 = vmatpush3.msra.mxu0 %v325_v22 }
  0x70   : > { %894 = vmatpush3.msra.mxu1 %v461_v23  ;;  %851 = vmatprep.subr.mxu0 %v324_v24 }
  0x71   : > { %895 = vmatprep.subr.mxu1 %v460_v25  ;;  %852 = vmatpush3.msra.mxu0 %v324_v24 }
  0x72   : > { %896 = vmatpush3.msra.mxu1 %v460_v25  ;;  %853 = vmatprep.subr.mxu0 %v323_v26 }
  0x73   : > { %897 = vmatprep.subr.mxu1 %v459_v27  ;;  %854 = vmatpush3.msra.mxu0 %v323_v26 }
  0x74   : > { %898 = vmatpush3.msra.mxu1 %v459_v27  ;;  %855 = vmatprep.subr.mxu0 %v322_v28 }
  0x75   : > { %899 = vmatprep.subr.mxu1 %v458_v29  ;;  %856 = vmatpush3.msra.mxu0 %v322_v28 }
  0x76   : > { %900 = vmatpush3.msra.mxu1 %v458_v29  ;;  %857 = vmatprep.subr.mxu0 %v321_v30 }
  0x77   : > { %901 = vmatprep.subr.mxu1 %v457_v31  ;;  %858 = vmatpush3.msra.mxu0 %v321_v30 }
  0x78   : > { %859 = vmatprep.mubr.f32.mxu0 %v313_v32  ;;  %902 = vmatpush3.msra.mxu1 %v457_v31 }
  0x79   : > { %903 = vmatprep.mubr.f32.mxu1 %v313_v32  ;;  %860 = vmatmul.mubr.f32.vlgmr.msra.gmra.mxu0 %v314_v33 }
  0x7a   : > { %904 = vmatmul.mubr.f32.vlgmr.msra.gmra.mxu1 %v314_v33  ;;  %862 = vmatprep.mubr.f32.mxu0 %v315_v34 }
  0x7b   : > { %906 = vmatprep.mubr.f32.mxu1 %v315_v34 }
  0x7d   : > { %863 = vmatmul.mubr.f32.gmra.mxu0 %v316_v35 }
  0x7e   : > { %907 = vmatmul.mubr.f32.gmra.mxu1 %v316_v35  ;;  %865 = vmatprep.mubr.f32.mxu0 %v317_v36 }
  0x7f   : > { %909 = vmatprep.mubr.f32.mxu1 %v317_v36 }
  0x81   : > { %866 = vmatmul.mubr.f32.gmra.mxu0 %v318_v37 }
  0x82   : > { %910 = vmatmul.mubr.f32.gmra.mxu1 %v318_v37  ;;  %868 = vmatprep.mubr.f32.mxu0 %v319_v38 }
  0x83   : > { %912 = vmatprep.mubr.f32.mxu1 %v319_v38 }
  0x85   : > { %869 = vmatmul.mubr.f32.gmra.mxu0 %v320_v39 }
  0x86   : > { %913 = vmatmul.mubr.f32.gmra.mxu1 %v320_v39 }
 0x139   : > { %v861_v42 = vpop.f32.mrf.mxu0 }
 0x13a   : > { %v905_v43 = vpop.f32.mrf.mxu1  ;;  %v416_v44 = vadd.f32 %v861_v42, %v766_v40 }
 0x13b   : > { %v552_v45 = vadd.f32 %v905_v43, %v767_v41  ;;  %v410_v46 = vpop.f32.mrf.mxu0 }
 0x13c   : > { %v546_v47 = vpop.f32.mrf.mxu1  ;;  %450 = vst [vmem:[%s1383_s20 + $0x8] sm:$0xff] %v416_v44  ;;  %v411_v48 = vadd.f32 %v766_v40, %v410_v46 }
 0x13d   : > { %586 = vst [vmem:[%s1387_s14 + $0x8] sm:$0xff] %v552_v45  ;;  %v547_v49 = vadd.f32 %v767_v41, %v546_v47  ;;  %v864_v50 = vpop.f32.mrf.mxu0 }
 0x13e   : > { %v908_v51 = vpop.f32.mrf.mxu1  ;;  %449 = vst [vmem:[%s1383_s20] sm:$0xff] %v411_v48  ;;  %v426_v52 = vadd.f32 %v864_v50, %v766_v40 }
 0x13f   : > { %585 = vst [vmem:[%s1387_s14] sm:$0xff] %v547_v49  ;;  %v562_v53 = vadd.f32 %v908_v51, %v767_v41  ;;  %v420_v54 = vpop.f32.mrf.mxu0 }
 0x140   : > { %v556_v55 = vpop.f32.mrf.mxu1  ;;  %452 = vst [vmem:[%s1383_s20 + $0x18] sm:$0xff] %v426_v52  ;;  %v421_v56 = vadd.f32 %v766_v40, %v420_v54 }
 0x141   : > { %588 = vst [vmem:[%s1387_s14 + $0x18] sm:$0xff] %v562_v53  ;;  %v557_v57 = vadd.f32 %v767_v41, %v556_v55  ;;  %v867_v58 = vpop.f32.mrf.mxu0 }
 0x142   : > { %v911_v59 = vpop.f32.mrf.mxu1  ;;  %451 = vst [vmem:[%s1383_s20 + $0x10] sm:$0xff] %v421_v56  ;;  %v436_v60 = vadd.f32 %v867_v58, %v766_v40 }
 0x143   : > { %587 = vst [vmem:[%s1387_s14 + $0x10] sm:$0xff] %v557_v57  ;;  %v572_v61 = vadd.f32 %v911_v59, %v767_v41  ;;  %v430_v62 = vpop.f32.mrf.mxu0 }
 0x144   : > { %v566_v63 = vpop.f32.mrf.mxu1  ;;  %454 = vst [vmem:[%s1383_s20 + $0x28] sm:$0xff] %v436_v60  ;;  %v431_v0 = vadd.f32 %v766_v40, %v430_v62 }
 0x145   : > { %590 = vst [vmem:[%s1387_s14 + $0x28] sm:$0xff] %v572_v61  ;;  %v567_v1 = vadd.f32 %v767_v41, %v566_v63  ;;  %v870_v2 = vpop.f32.mrf.mxu0 }
 0x146   : > { %v914_v3 = vpop.f32.mrf.mxu1  ;;  %453 = vst [vmem:[%s1383_s20 + $0x20] sm:$0xff] %v431_v0  ;;  %v446_v4 = vadd.f32 %v870_v2, %v766_v40 }
 0x147   : > { %589 = vst [vmem:[%s1387_s14 + $0x20] sm:$0xff] %v567_v1  ;;  %v582_v5 = vadd.f32 %v914_v3, %v767_v41  ;;  %v440_v6 = vpop.f32.mrf.mxu0 }
 0x148   : > { %v576_v7 = vpop.f32.mrf.mxu1  ;;  %456 = vst [vmem:[%s1383_s20 + $0x38] sm:$0xff] %v446_v4  ;;  %v441_v8 = vadd.f32 %v766_v40, %v440_v6 }
 0x149   : > { %592 = vst [vmem:[%s1387_s14 + $0x38] sm:$0xff] %v582_v5  ;;  %v577_v9 = vadd.f32 %v767_v41, %v576_v7 }
 0x14a   : > { %455 = vst [vmem:[%s1383_s20 + $0x30] sm:$0xff] %v441_v8 }
 0x14b   : > { %591 = vst [vmem:[%s1387_s14 + $0x30] sm:$0xff] %v577_v9 }
 0x14c   : > { %1084 = shalt.err (!%p1081_p3)
}
 0x14d   : > { %s1085_s20 = scalar_lea.hbm %s1410_s11, 1024  ;;  %s1089_s25 = scalar_lea.hbm %s1494_s5, 2048 }
 0x14e   : > { %p1086_p11 = scmp.ne.s32.totalorder %s1410_s11, %s1085_s20  ;;  %p1090_p4 = scmp.lt.s32.totalorder %s1410_s11, %s1494_s5 }
 0x14f   : > { %p1091_p6 = scmp.lt.s32.totalorder %s1089_s25, %s1085_s20 }
 0x150   : > { %p1087_p9 = pnand %p1086_p11, %p1514_p2 }
 0x151   : > { %p1092_p8 = por %p1091_p6, %p1090_p4 }
 0x152   : > { %p1088_p1 = pneg %p1087_p9 }
 0x154   : > { %p1093_p5 = pnand %p1092_p8, %p1088_p1 }
 0x156   : > { %1096 = shalt.err (!%p1093_p5)
}
 0x157   : > { %s1177_s29 = smov 128   ;;  %s1178_s15 = smov 8  }
 0x158   : > { %925 = dma.vmem_to_hbm [thread:$0]  (%p1514_p2), %s1401_s16, 1024, %s1410_s11, %s594_s27, %s1177_s29, %s1177_s29, %s1178_s15  }
 0x159   : > { %s599_s17 = scalar_lea.sflag [#allocation10], %s1351_s12  ;;  %s1097_s26 = scalar_lea.vmem %s1403_s8, 1024 }
 0x15a   : > { %p1098_p7 = scmp.ne.s32.totalorder %s1403_s8, %s1097_s26  ;;  %s1179_s20 = smov [#allocation9]  }
 0x15b   : > { %s1101_s14 = sshll.u32 %s1179_s20, 4  ;;  %s1102_s14 = int_to_ptr.vmem [resolvable:$false] %s1101_s14 }
 0x15c   : > { %p1099_p12 = pnand %p1098_p7, %p1514_p2  ;;  %s1103_s10 = scalar_lea.vmem %s1102_s14, 2048 }
 0x15d   : > { %p1104_p0 = scmp.lt.s32.totalorder %s1403_s8, %s1102_s14  ;;  %p1105_p10 = scmp.lt.s32.totalorder %s1103_s10, %s1097_s26 }
 0x15e   : > { %p1100_p13 = pneg %p1099_p12 }
 0x15f   : > { %p1106_p3 = por %p1105_p10, %p1104_p0 }
 0x161   : > { %p1107_p11 = pnand %p1106_p3, %p1100_p13 }
 0x163   : > { %1110 = shalt.err (!%p1107_p11)
}
 0x164   : > { %s1111_s16 = scalar_lea.hbm %s1417_s9, 1024  ;;  %s1115_s27 = scalar_lea.hbm %s1495_s6, 2048 }
 0x165   : > { %p1112_p9 = scmp.ne.s32.totalorder %s1417_s9, %s1111_s16  ;;  %p1116_p6 = scmp.lt.s32.totalorder %s1417_s9, %s1495_s6 }
 0x166   : > { %p1117_p8 = scmp.lt.s32.totalorder %s1115_s27, %s1111_s16 }
 0x167   : > { %p1113_p1 = pnand %p1112_p9, %p1514_p2 }
 0x168   : > { %p1118_p5 = por %p1117_p8, %p1116_p6 }
 0x169   : > { %p1114_p4 = pneg %p1113_p1 }
 0x16b   : > { %p1119_p7 = pnand %p1118_p5, %p1114_p4 }
 0x16d   : > { %1122 = shalt.err (!%p1119_p7)
}
 0x16e   : > { %926 = dma.vmem_to_hbm [thread:$0]  (%p1514_p2), %s1403_s8, 1024, %s1417_s9, %s599_s17, %s1177_s29, %s1177_s29, %s1178_s15  }
 0x16f PF: > { %s643_s18 = sand.u32 1, %s1157_s21   ;;  %p1515_p12 = scmp.ne.s32.totalorder %s1503_s28, 0 }
 0x170   : > { %p1516_p13 = scmp.ge.s32.totalorder %s1169_s24, 2  ;;  %s644_s26 = scalar_lea.sflag [#allocation4], %s643_s18 }
 0x172   : > { %p941_p0 = pnand %p1516_p13, %p1515_p12 }
 0x174   : > { %p942_p10 = pneg %p941_p0 }
 0x176   : > { %1148 = dma.done.wait (%p942_p10), %s644_s26, 1024  }
 0x177   : > { %1150 = vsyncadd (%p942_p10), %s644_s26, 4294966272  ;;  %s653_s20 = scalar_lea.sflag [#allocation10], %s643_s18 }
 0x178   : > { %1152 = dma.done.wait (%p942_p10), %s653_s20, 1024  }
 0x179   : > { %1154 = vsyncadd (%p942_p10), %s653_s20, 4294966272  ;;  %p24_p2 = scmp.ge.s32.totalorder %s1293_s19, 4   ;;  %s1517_s21 = smov %s1161_s22 }
 0x17a   : > { %s1518_s22 = smov %s1165_s23  ;;  %s1519_s23 = smov %s1309_s7 }
 0x17b   : > { %s1520_s24 = smov %s1293_s19  ;;  %26 = sbr.rel (!%p24_p2) target bundleno = 8 (0x8), region = 110 }
 0x180   :  { %658 = vsyncpa [#allocation3], 1 }
 0x181   :  { %660 = vsyncpa [#allocation3 + $0x1], 1 }
 0x182   :  { %661 = vsyncpa [#allocation6], 1 }
 0x183   :  { %662 = vsyncpa [#allocation4], 1 }
 0x184   :  { %664 = vsyncpa [#allocation4 + $0x1], 1 }
 0x185   :  { %665 = vsyncpa [#allocation10], 1 }
 0x186   :  { %667 = vsyncpa [#allocation10 + $0x1], 1 }

</bundles_post_ra>
